<compile_context>
chip_gen: v7x
topology: tpu7x:2x2x1
jax: 0.10.0
libtpu: 0.0.40
codegen_flags: <defaults>
</compile_context>

<pallas_src>
import jax
import jax.numpy as jnp
from jax.experimental import pallas as pl
from jax.experimental.pallas import tpu as pltpu

LN_EPS = 1e-5


def _round_up(n, m):
    return (n + m - 1) // m * m


def _layernorm_1pass(x, gamma, beta):
    """LayerNorm with one cross-lane sweep (sum and sum-of-squares together)."""
    inv_d = 1.0 / x.shape[-1]
    s = jnp.sum(x, axis=-1, keepdims=True)
    ss = jnp.sum(x * x, axis=-1, keepdims=True)
    mean = s * inv_d
    var = ss * inv_d - mean * mean
    return (x - mean) * jax.lax.rsqrt(var + LN_EPS) * gamma + beta


def _make_ffn_kernel(dff_chunk, n_chunks):
    """Kernel factory; dff is processed in `n_chunks` static chunks so the f32
    `h` intermediate is bounded by (tm, dff_chunk)."""

    def ffn_kernel(tgt_ref, tgt_in_ref,
                   w1_ref, b1_ref, w2_ref, b2_ref,
                   g2_ref, be2_ref, g3_ref, be3_ref,
                   out_ref):
        # Residual add (dropout2 identity at inference); element-wise math in f32.
        x = tgt_ref[...].astype(jnp.float32) + tgt_in_ref[...].astype(jnp.float32)
        x = _layernorm_1pass(x,
                             g2_ref[...].astype(jnp.float32),
                             be2_ref[...].astype(jnp.float32))

        w_dtype = w1_ref.dtype
        x_mm = x.astype(w_dtype)          # bf16 (or weight dtype) into the MXU

        # linear1 -> relu -> linear2, chunked over dim_feedforward.
        t2 = None
        for c in range(n_chunks):
            lo = c * dff_chunk
            hi = lo + dff_chunk
            h = jnp.dot(x_mm, w1_ref[:, lo:hi],
                        preferred_element_type=jnp.float32)
            h = jnp.maximum(h + b1_ref[:, lo:hi].astype(jnp.float32), 0.0)
            part = jnp.dot(h.astype(w_dtype), w2_ref[lo:hi, :],
                           preferred_element_type=jnp.float32)
            t2 = part if t2 is None else t2 + part
        t2 = t2 + b2_ref[...].astype(jnp.float32)

        # residual add (dropout3 identity) + norm3
        y = _layernorm_1pass(x + t2,
                             g3_ref[...].astype(jnp.float32),
                             be3_ref[...].astype(jnp.float32))
        out_ref[...] = y.astype(out_ref.dtype)

    return ffn_kernel


def _vmem_budget_bytes():
    """Generation-aware VMEM budget (v5e/v6e: 128 MiB physical, v7x: 64 MiB)."""
    try:
        cap = int(pltpu.get_tpu_info().vmem_capacity_bytes)
    except Exception:
        cap = 64 * 1024 * 1024            # conservative (v7x-sized) fallback
    # leave ~25% headroom for Mosaic-internal scratch; never ask for > ~100 MiB.
    return min(cap - cap // 4, 100 * 1024 * 1024)


def _choose_dff_chunk(dff, max_chunk=2048):
    """Largest 128-multiple divisor of dff that is <= max_chunk (or dff itself)."""
    if dff <= max_chunk:
        return dff
    for c in range(max_chunk - max_chunk % 128, 127, -128):
        if dff % c == 0:
            return c
    return dff


def _choose_tile_rows(n_rows, tile_rows, d_model, dff_chunk,
                      in_itemsize, static_bytes, budget):
    """Pick the row tile: big enough to amortize per-step overhead / fill the
    MXU, small enough to fit VMEM and to give >= 2 grid steps (v7x megacore)."""
    if n_rows <= 8:
        return n_rows                     # single block == full array dim
    tm = _round_up(min(tile_rows, _round_up(n_rows, 256)), 8)

    # Rough per-row VMEM cost: double-buffered tgt/tgt_input/out blocks plus
    # f32 intermediates (x, t2, h-chunk, y).
    per_row = (3 * 2 * d_model * in_itemsize
               + 4 * (3 * d_model + dff_chunk))
    while tm > 8 and static_bytes + tm * per_row > budget:
        tm = _round_up(max(tm // 2, 8), 8)

    # Ensure >= 2 grid steps so the "parallel" axis can use both v7x TCs.
    while tm > 8 and pl.cdiv(n_rows, tm) < 2:
        tm = _round_up(max(tm // 2, 8), 8)
    return tm


def ffn_forward(tgt, tgt_input, params, *, tile_rows=512):
    """tgt, tgt_input: (..., d_model).  Returns same shape and dtype as tgt."""
    orig_shape = tgt.shape
    d_model = orig_shape[-1]
    tgt2d = tgt.reshape(-1, d_model)
    tgt_in2d = tgt_input.reshape(-1, d_model)
    n_rows = tgt2d.shape[0]

    w1, b1, w2, b2, g2, be2, g3, be3 = params
    dff = w1.shape[1]
    dff_chunk = _choose_dff_chunk(dff)
    n_chunks = dff // dff_chunk if dff % dff_chunk == 0 else 1
    if n_chunks == 1:
        dff_chunk = dff

    # Static (single-buffered) VMEM consumers: weights + small vectors.
    static_bytes = ((w1.size + w2.size) * w1.dtype.itemsize
                    + (b1.size + b2.size + g2.size + be2.size
                       + g3.size + be3.size) * b1.dtype.itemsize)
    budget = _vmem_budget_bytes()

    tm = _choose_tile_rows(n_rows, tile_rows, d_model, dff_chunk,
                           tgt2d.dtype.itemsize, static_bytes, budget)
    grid = (pl.cdiv(n_rows, tm),)         # ragged last block: masked writeback,
                                          # no host-side pad / slice copies.

    row_spec = pl.BlockSpec((tm, d_model), lambda i: (i, 0))
    # Constant index_map -> DMA'd once; Buffered(1) -> single VMEM buffer.
    full = lambda shape: pl.BlockSpec(shape, lambda i: (0,) * len(shape),
                                      pipeline_mode=pl.Buffered(1))

    itm = tgt2d.dtype.itemsize
    flops = 2 * 2 * n_rows * d_model * dff                    # two matmuls
    bytes_accessed = int(
        3 * n_rows * d_model * itm                            # tgt, tgt_input, out
        + (w1.size + w2.size) * w1.dtype.itemsize             # weights
        + (b1.size + b2.size + g2.size + be2.size
           + g3.size + be3.size) * b1.dtype.itemsize)         # small vectors
    cost = pl.CostEstimate(flops=int(flops),
                           transcendentals=int(2 * n_rows),   # two rsqrt / row
                           bytes_accessed=bytes_accessed)

    out = pl.pallas_call(
        _make_ffn_kernel(dff_chunk, n_chunks),
        out_shape=jax.ShapeDtypeStruct((n_rows, d_model), tgt2d.dtype),
        grid_spec=pltpu.PrefetchScalarGridSpec(
            num_scalar_prefetch=0,
            grid=grid,
            in_specs=[
                row_spec,                       # tgt rows
                row_spec,                       # tgt_input rows
                full((d_model, dff)),           # W1
                full((1, dff)),                 # b1
                full((dff, d_model)),           # W2
                full((1, d_model)),             # b2
                full((1, d_model)),             # norm2 gamma
                full((1, d_model)),             # norm2 beta
                full((1, d_model)),             # norm3 gamma
                full((1, d_model)),             # norm3 beta
            ],
            out_specs=row_spec,
        ),
        compiler_params=pltpu.CompilerParams(
            dimension_semantics=("parallel",),  # row tiles shard across TCs
            vmem_limit_bytes=int(budget)),      # generation-aware VMEM cap
        cost_estimate=cost,
    )(tgt2d, tgt_in2d, w1, b1, w2, b2, g2, be2, g3, be3)

    return out.reshape(orig_shape)


def init_params(key, d_model, dff, dtype=jnp.float32, weight_dtype=jnp.bfloat16):
    """Weights pre-transposed to (in, out).  bf16 weights hit native MXU rate."""
    # NOTE: keep d_model a multiple of 128 for lane-dense (unmasked) stores;
    # pad the feature axis at layout time if a model config ever violates this.
    k1, k2 = jax.random.split(key)
    lim1 = 1.0 / jnp.sqrt(d_model)
    lim2 = 1.0 / jnp.sqrt(dff)
    w1 = jax.random.uniform(k1, (d_model, dff), jnp.float32, -lim1, lim1).astype(weight_dtype)
    b1 = jnp.full((1, dff), 0.01, dtype)
    w2 = jax.random.uniform(k2, (dff, d_model), jnp.float32, -lim2, lim2).astype(weight_dtype)
    b2 = jnp.full((1, d_model), -0.01, dtype)
    g2 = jnp.ones((1, d_model), dtype)
    be2 = jnp.zeros((1, d_model), dtype)
    g3 = jnp.ones((1, d_model), dtype)
    be3 = jnp.zeros((1, d_model), dtype)
    return (w1, b1, w2, b2, g2, be2, g3, be3)


def ffn_reference(tgt, tgt_input, params):
    """Pure-JAX reference (two-pass LayerNorm, same bf16 matmul inputs)."""
    w1, b1, w2, b2, g2, be2, g3, be3 = params

    def ln(x, gamma, beta):
        mean = jnp.mean(x, axis=-1, keepdims=True)
        var = jnp.mean((x - mean) ** 2, axis=-1, keepdims=True)
        return ((x - mean) * jax.lax.rsqrt(var + LN_EPS)
                * gamma.astype(jnp.float32) + beta.astype(jnp.float32))

    x = tgt.astype(jnp.float32) + tgt_input.astype(jnp.float32)
    x = ln(x, g2, be2)
    h = jnp.dot(x.astype(w1.dtype), w1, preferred_element_type=jnp.float32)
    h = jnp.maximum(h + b1.astype(jnp.float32), 0.0)
    t2 = jnp.dot(h.astype(w2.dtype), w2, preferred_element_type=jnp.float32)
    t2 = t2 + b2.astype(jnp.float32)
    return ln(x + t2, g3, be3).astype(tgt.dtype)


if __name__ == "__main__":
    # Small but lane-dense shapes: d_model a multiple of 128 keeps vector
    # stores unmasked and the MXU K/N dims full.
    seq, batch, d_model, dff = 8, 4, 128, 256
    key = jax.random.PRNGKey(0)
    k_t, k_ti, k_p = jax.random.split(key, 3)

    tgt = jax.random.normal(k_t, (seq, batch, d_model), jnp.float32)
    tgt_input = jax.random.normal(k_ti, (seq, batch, d_model), jnp.float32)
    params = init_params(k_p, d_model, dff, dtype=jnp.float32,
                         weight_dtype=jnp.bfloat16)

    out = ffn_forward(tgt, tgt_input, params)
    out = jax.block_until_ready(out)

    ref = ffn_reference(tgt, tgt_input, params)
    assert out.shape == tgt.shape
    assert jnp.allclose(out, ref, atol=2e-3, rtol=2e-3), "mismatch vs reference"
    print("KERNEL_OK")
</pallas_src>

<mosaic_0001>
module attributes {stable_mosaic.version = 11 : i64} {
  func.func @ffn_kernel(%arg0: i32, %arg1: memref<16x128xf32, #tpu.memory_space<vmem>>, %arg2: memref<16x128xf32, #tpu.memory_space<vmem>>, %arg3: memref<128x256xbf16, #tpu.memory_space<vmem>>, %arg4: memref<1x256xf32, #tpu.memory_space<vmem>>, %arg5: memref<256x128xbf16, #tpu.memory_space<vmem>>, %arg6: memref<1x128xf32, #tpu.memory_space<vmem>>, %arg7: memref<1x128xf32, #tpu.memory_space<vmem>>, %arg8: memref<1x128xf32, #tpu.memory_space<vmem>>, %arg9: memref<1x128xf32, #tpu.memory_space<vmem>>, %arg10: memref<1x128xf32, #tpu.memory_space<vmem>>, %arg11: memref<16x128xf32, #tpu.memory_space<vmem>>) attributes {dimension_semantics = [#tpu.dimension_semantics<parallel>], iteration_bounds = array<i64: 2>, scalar_prefetch = 0 : i64, scratch_operands = 0 : i64, tpu.core_type = #tpu.core_type<tc>, window_params = [{transform_indices = @transform_0, window_bounds = array<i64: 16, 128>}, {transform_indices = @transform_1, window_bounds = array<i64: 16, 128>}, {pipeline_mode = #tpu.pipeline_mode<synchronous>, transform_indices = @transform_2, window_bounds = array<i64: 128, 256>}, {pipeline_mode = #tpu.pipeline_mode<synchronous>, transform_indices = @transform_3, window_bounds = array<i64: 1, 256>}, {pipeline_mode = #tpu.pipeline_mode<synchronous>, transform_indices = @transform_4, window_bounds = array<i64: 256, 128>}, {pipeline_mode = #tpu.pipeline_mode<synchronous>, transform_indices = @transform_5, window_bounds = array<i64: 1, 128>}, {pipeline_mode = #tpu.pipeline_mode<synchronous>, transform_indices = @transform_6, window_bounds = array<i64: 1, 128>}, {pipeline_mode = #tpu.pipeline_mode<synchronous>, transform_indices = @transform_7, window_bounds = array<i64: 1, 128>}, {pipeline_mode = #tpu.pipeline_mode<synchronous>, transform_indices = @transform_8, window_bounds = array<i64: 1, 128>}, {pipeline_mode = #tpu.pipeline_mode<synchronous>, transform_indices = @transform_9, window_bounds = array<i64: 1, 128>}, {transform_indices = @transform_10, window_bounds = array<i64: 16, 128>}]} {
    %c0 = arith.constant 0 : index
    %c0_0 = arith.constant 0 : index
    %0 = vector.load %arg1[%c0, %c0_0] : memref<16x128xf32, #tpu.memory_space<vmem>>, vector<16x128xf32>
    %c0_1 = arith.constant 0 : index
    %c0_2 = arith.constant 0 : index
    %1 = vector.load %arg2[%c0_1, %c0_2] : memref<16x128xf32, #tpu.memory_space<vmem>>, vector<16x128xf32>
    %2 = arith.addf %0, %1 : vector<16x128xf32>
    %c0_3 = arith.constant 0 : index
    %c0_4 = arith.constant 0 : index
    %3 = vector.load %arg7[%c0_3, %c0_4] : memref<1x128xf32, #tpu.memory_space<vmem>>, vector<1x128xf32>
    %c0_5 = arith.constant 0 : index
    %c0_6 = arith.constant 0 : index
    %4 = vector.load %arg8[%c0_5, %c0_6] : memref<1x128xf32, #tpu.memory_space<vmem>>, vector<1x128xf32>
    %cst = arith.constant dense<0.000000e+00> : vector<16xf32>
    %5 = vector.multi_reduction <add>, %2, %cst [1] : vector<16x128xf32> to vector<16xf32>
    %6 = vector.shape_cast %5 : vector<16xf32> to vector<16x1xf32>
    %7 = arith.mulf %2, %2 : vector<16x128xf32>
    %cst_7 = arith.constant dense<0.000000e+00> : vector<16xf32>
    %8 = vector.multi_reduction <add>, %7, %cst_7 [1] : vector<16x128xf32> to vector<16xf32>
    %9 = vector.shape_cast %8 : vector<16xf32> to vector<16x1xf32>
    %cst_8 = arith.constant 7.812500e-03 : f32
    %10 = vector.broadcast %cst_8 : f32 to vector<16x1xf32>
    %11 = arith.mulf %6, %10 : vector<16x1xf32>
    %cst_9 = arith.constant 7.812500e-03 : f32
    %12 = vector.broadcast %cst_9 : f32 to vector<16x1xf32>
    %13 = arith.mulf %9, %12 : vector<16x1xf32>
    %14 = arith.mulf %11, %11 : vector<16x1xf32>
    %15 = arith.subf %13, %14 : vector<16x1xf32>
    %16 = vector.broadcast %11 : vector<16x1xf32> to vector<16x128xf32>
    %17 = arith.subf %2, %16 : vector<16x128xf32>
    %cst_10 = arith.constant 9.99999974E-6 : f32
    %18 = vector.broadcast %cst_10 : f32 to vector<16x1xf32>
    %19 = arith.addf %15, %18 : vector<16x1xf32>
    %20 = math.rsqrt %19 : vector<16x1xf32>
    %21 = vector.broadcast %20 : vector<16x1xf32> to vector<16x128xf32>
    %22 = arith.mulf %17, %21 : vector<16x128xf32>
    %23 = vector.broadcast %3 : vector<1x128xf32> to vector<16x128xf32>
    %24 = arith.mulf %22, %23 : vector<16x128xf32>
    %25 = vector.broadcast %4 : vector<1x128xf32> to vector<16x128xf32>
    %26 = arith.addf %24, %25 : vector<16x128xf32>
    %27 = arith.truncf %26 : vector<16x128xf32> to vector<16x128xbf16>
    %c0_11 = arith.constant 0 : index
    %c0_12 = arith.constant 0 : index
    %28 = vector.load %arg3[%c0_11, %c0_12] : memref<128x256xbf16, #tpu.memory_space<vmem>>, vector<128x256xbf16>
    %cst_13 = arith.constant dense<0.000000e+00> : vector<16x256xf32>
    %29 = tpu.matmul %27, %28, %cst_13 {dimension_numbers = #tpu.dot_dimension_numbers<[1], [0], [0], [1], [0, 0, 1, 1], [], []>} : vector<16x128xbf16>, vector<128x256xbf16>, vector<16x256xf32> -> vector<16x256xf32>
    %c0_14 = arith.constant 0 : index
    %c0_15 = arith.constant 0 : index
    %30 = vector.load %arg4[%c0_14, %c0_15] : memref<1x256xf32, #tpu.memory_space<vmem>>, vector<1x256xf32>
    %31 = vector.broadcast %30 : vector<1x256xf32> to vector<16x256xf32>
    %32 = arith.addf %29, %31 : vector<16x256xf32>
    %cst_16 = arith.constant 0.000000e+00 : f32
    %33 = vector.broadcast %cst_16 : f32 to vector<16x256xf32>
    %34 = arith.maximumf %32, %33 : vector<16x256xf32>
    %35 = arith.truncf %34 : vector<16x256xf32> to vector<16x256xbf16>
    %c0_17 = arith.constant 0 : index
    %c0_18 = arith.constant 0 : index
    %36 = vector.load %arg5[%c0_17, %c0_18] : memref<256x128xbf16, #tpu.memory_space<vmem>>, vector<256x128xbf16>
    %cst_19 = arith.constant dense<0.000000e+00> : vector<16x128xf32>
    %37 = tpu.matmul %35, %36, %cst_19 {dimension_numbers = #tpu.dot_dimension_numbers<[1], [0], [0], [1], [0, 0, 1, 1], [], []>} : vector<16x256xbf16>, vector<256x128xbf16>, vector<16x128xf32> -> vector<16x128xf32>
    %c0_20 = arith.constant 0 : index
    %c0_21 = arith.constant 0 : index
    %38 = vector.load %arg6[%c0_20, %c0_21] : memref<1x128xf32, #tpu.memory_space<vmem>>, vector<1x128xf32>
    %39 = vector.broadcast %38 : vector<1x128xf32> to vector<16x128xf32>
    %40 = arith.addf %37, %39 : vector<16x128xf32>
    %41 = arith.addf %26, %40 : vector<16x128xf32>
    %c0_22 = arith.constant 0 : index
    %c0_23 = arith.constant 0 : index
    %42 = vector.load %arg9[%c0_22, %c0_23] : memref<1x128xf32, #tpu.memory_space<vmem>>, vector<1x128xf32>
    %c0_24 = arith.constant 0 : index
    %c0_25 = arith.constant 0 : index
    %43 = vector.load %arg10[%c0_24, %c0_25] : memref<1x128xf32, #tpu.memory_space<vmem>>, vector<1x128xf32>
    %cst_26 = arith.constant dense<0.000000e+00> : vector<16xf32>
    %44 = vector.multi_reduction <add>, %41, %cst_26 [1] : vector<16x128xf32> to vector<16xf32>
    %45 = vector.shape_cast %44 : vector<16xf32> to vector<16x1xf32>
    %46 = arith.mulf %41, %41 : vector<16x128xf32>
    %cst_27 = arith.constant dense<0.000000e+00> : vector<16xf32>
    %47 = vector.multi_reduction <add>, %46, %cst_27 [1] : vector<16x128xf32> to vector<16xf32>
    %48 = vector.shape_cast %47 : vector<16xf32> to vector<16x1xf32>
    %cst_28 = arith.constant 7.812500e-03 : f32
    %49 = vector.broadcast %cst_28 : f32 to vector<16x1xf32>
    %50 = arith.mulf %45, %49 : vector<16x1xf32>
    %cst_29 = arith.constant 7.812500e-03 : f32
    %51 = vector.broadcast %cst_29 : f32 to vector<16x1xf32>
    %52 = arith.mulf %48, %51 : vector<16x1xf32>
    %53 = arith.mulf %50, %50 : vector<16x1xf32>
    %54 = arith.subf %52, %53 : vector<16x1xf32>
    %55 = vector.broadcast %50 : vector<16x1xf32> to vector<16x128xf32>
    %56 = arith.subf %41, %55 : vector<16x128xf32>
    %cst_30 = arith.constant 9.99999974E-6 : f32
    %57 = vector.broadcast %cst_30 : f32 to vector<16x1xf32>
    %58 = arith.addf %54, %57 : vector<16x1xf32>
    %59 = math.rsqrt %58 : vector<16x1xf32>
    %60 = vector.broadcast %59 : vector<16x1xf32> to vector<16x128xf32>
    %61 = arith.mulf %56, %60 : vector<16x128xf32>
    %62 = vector.broadcast %42 : vector<1x128xf32> to vector<16x128xf32>
    %63 = arith.mulf %61, %62 : vector<16x128xf32>
    %64 = vector.broadcast %43 : vector<1x128xf32> to vector<16x128xf32>
    %65 = arith.addf %63, %64 : vector<16x128xf32>
    %c0_31 = arith.constant 0 : index
    %c0_32 = arith.constant 0 : index
    %66 = vector.load %arg11[%c0_31, %c0_32] : memref<16x128xf32, #tpu.memory_space<vmem>>, vector<16x128xf32>
    tpu.vector_store %arg11[%c0_31, %c0_32], %65 {strides = array<i32>} : memref<16x128xf32, #tpu.memory_space<vmem>>, vector<16x128xf32>,
    return
  }
  func.func @transform_0(%arg0: i32) -> (i32, i32) {
    %c0_i32 = arith.constant 0 : i32
    %c0_i32_0 = arith.constant 0 : i32
    return %arg0, %c0_i32 : i32, i32
  }
  func.func @transform_1(%arg0: i32) -> (i32, i32) {
    %c0_i32 = arith.constant 0 : i32
    %c0_i32_0 = arith.constant 0 : i32
    return %arg0, %c0_i32 : i32, i32
  }
  func.func @transform_2(%arg0: i32) -> (i32, i32) {
    %c0_i32 = arith.constant 0 : i32
    %c0_i32_0 = arith.constant 0 : i32
    %c0_i32_1 = arith.constant 0 : i32
    return %c0_i32, %c0_i32_0 : i32, i32
  }
  func.func @transform_3(%arg0: i32) -> (i32, i32) {
    %c0_i32 = arith.constant 0 : i32
    %c0_i32_0 = arith.constant 0 : i32
    %c0_i32_1 = arith.constant 0 : i32
    return %c0_i32, %c0_i32_0 : i32, i32
  }
  func.func @transform_4(%arg0: i32) -> (i32, i32) {
    %c0_i32 = arith.constant 0 : i32
    %c0_i32_0 = arith.constant 0 : i32
    %c0_i32_1 = arith.constant 0 : i32
    return %c0_i32, %c0_i32_0 : i32, i32
  }
  func.func @transform_5(%arg0: i32) -> (i32, i32) {
    %c0_i32 = arith.constant 0 : i32
    %c0_i32_0 = arith.constant 0 : i32
    %c0_i32_1 = arith.constant 0 : i32
    return %c0_i32, %c0_i32_0 : i32, i32
  }
  func.func @transform_6(%arg0: i32) -> (i32, i32) {
    %c0_i32 = arith.constant 0 : i32
    %c0_i32_0 = arith.constant 0 : i32
    %c0_i32_1 = arith.constant 0 : i32
    return %c0_i32, %c0_i32_0 : i32, i32
  }
  func.func @transform_7(%arg0: i32) -> (i32, i32) {
    %c0_i32 = arith.constant 0 : i32
    %c0_i32_0 = arith.constant 0 : i32
    %c0_i32_1 = arith.constant 0 : i32
    return %c0_i32, %c0_i32_0 : i32, i32
  }
  func.func @transform_8(%arg0: i32) -> (i32, i32) {
    %c0_i32 = arith.constant 0 : i32
    %c0_i32_0 = arith.constant 0 : i32
    %c0_i32_1 = arith.constant 0 : i32
    return %c0_i32, %c0_i32_0 : i32, i32
  }
  func.func @transform_9(%arg0: i32) -> (i32, i32) {
    %c0_i32 = arith.constant 0 : i32
    %c0_i32_0 = arith.constant 0 : i32
    %c0_i32_1 = arith.constant 0 : i32
    return %c0_i32, %c0_i32_0 : i32, i32
  }
  func.func @transform_10(%arg0: i32) -> (i32, i32) {
    %c0_i32 = arith.constant 0 : i32
    %c0_i32_0 = arith.constant 0 : i32
    return %arg0, %c0_i32 : i32, i32
  }
}

</mosaic_0001>

<bundles_post_ra>
// kernel: tpu_custom_call.1
= control target key start
LH: loop header
LB: loop body
LE: loop exit
PB: predicated region body
PF: predicated region fallthrough
CT: control target
= control target key end

     0   :  { %s1810_s0 = inlined_call_operand.hbm [shape: f32[32,128], index: 0, kind: input, shape index: {}]   ;;  %s1811_s1 = inlined_call_operand.hbm [shape: f32[32,128], index: 1, kind: input, shape index: {}]   ;;  %s1812_s2 = inlined_call_operand.hbm [shape: bf16[128,256], index: 2, kind: input, shape index: {}]   ;;  %s1813_s3 = inlined_call_operand.vmem [shape: f32[1,256], index: 3, kind: input, shape index: {}]   ;;  %s1814_s4 = inlined_call_operand.hbm [shape: bf16[256,128], index: 4, kind: input, shape index: {}]   ;;  %s1815_s5 = inlined_call_operand.vmem [shape: f32[1,128], index: 5, kind: input, shape index: {}]   ;;  %s1816_s6 = inlined_call_operand.vmem [shape: f32[1,128], index: 6, kind: input, shape index: {}]   ;;  %s1817_s7 = inlined_call_operand.vmem [shape: f32[1,128], index: 7, kind: input, shape index: {}]   ;;  %s1818_s8 = inlined_call_operand.vmem [shape: f32[1,128], index: 8, kind: input, shape index: {}]   ;;  %s1819_s9 = inlined_call_operand.vmem [shape: f32[1,128], index: 9, kind: input, shape index: {}]   ;;  %s1820_s10 = inlined_call_operand.hbm [shape: f32[32,128], index: 10, kind: output, shape index: {}]  }
   0x1   :  { %1831 = sst [smem:[#allocation20_spill]] %s1810_s0 }
   0x2   :  { %1832 = sst [smem:[#allocation21_spill]] %s1812_s2 }
   0x3   :  { %1833 = sst [smem:[#allocation22_spill]] %s1814_s4 }
   0x4   :  { %15 = vsyncpa [#allocation3], 0 }
   0x5   :  { %17 = vsyncpa [#allocation3 + $0x1], 0 }
   0x6   :  { %18 = vsyncpa [#allocation6], 0 }
   0x7   :  { %20 = vsyncpa [#allocation6 + $0x1], 0 }
   0x8   :  { %21 = vsyncpa [#allocation9], 0 }
   0x9   :  { %22 = vsyncpa [#allocation4], 0 }
   0xa   :  { %24 = vsyncpa [#allocation4 + $0x1], 0  ;;  %s1486_s13 = smov 0   ;;  %s1488_s14 = smov 0  }
   0xb   :  { %s1490_s15 = smov 0   ;;  %s1492_s16 = smov 0  }
   0xc LB: > { %1834 = sst [smem:[#allocation16_spill]] %s1405_s13  ;;  %s1507_s17 = sadd.s32 4294967295, %s1417_s16   ;;  %s1417_s16 = sphi %s1492_s16, %s1864_s16   ;;  %s1413_s15 = sphi %s1490_s15, %s1861_s15   ;;  %s1409_s14 = sphi %s1488_s14, %s1863_s14   ;;  %s1405_s13 = sphi %s1486_s13, %s1862_s13  }
   0xd   : > { %1835 = sst [smem:[#allocation17_spill]] %s1413_s15  ;;  %s1012_s18 = sadd.s32 4294967294, %s1417_s16  }
   0xe   : > { %p50_p0 = scmp.ne.s32.totalorder %s1409_s14, %s1405_s13  ;;  %p1821_p1 = scmp.eq.s32.totalorder %s1507_s17, 0 }
   0xf   : > { %p274_p3 = scmp.eq.s32.totalorder %s1012_s18, 1  ;;  %p1013_p5 = scmp.ge.s32.totalorder %s1417_s16, 1 }
  0x10   : > { %p1516_p4 = por %p1821_p1, %p50_p0  ;;  %p281_p7 = scmp.lt.s32.totalorder %s1417_s16, 3 }
  0x11   : > { %p1521_p6 = por %p274_p3, %p50_p0  ;;  %s1419_s22 = smov [#allocation7]  }
  0x12   : > { %s1836_s19 = scalar_select %p1516_p4, 1, 0 }
  0x13   : > { %s1837_s20 = scalar_select %p1521_p6, 1, 0 }
  0x14   : > { %p1526_p8 = pnand %p1013_p5, %p281_p7  ;;  %s293_s23 = sshll.u32 %s1419_s22, 4  ;;  %s1530_s23 = int_to_ptr.vmem [resolvable:$true] %s293_s23 }
  0x15   : > { %1838 = sst [smem:[#allocation18_spill]] %s1837_s20  ;;  %s1420_s25 = smov [#allocation8]  }
  0x16   : > { %p1110_p9 = pneg %p1526_p8  ;;  %s309_s26 = sshll.u32 %s1420_s25, 4  ;;  %s1541_s26 = int_to_ptr.vmem [resolvable:$true] %s309_s26 }
  0x17   : > { %s1841_s2 = sld [smem:[#allocation21_spill]] }
  0x18   : > { %p1537_p11 = pnand %p1110_p9, %p1821_p1 }
  0x1a   : > { %p1225_p13 = pneg %p1537_p11 }
  0x1d   : > { %s1223_s29 = scalar_lea.hbm %s1841_s2, 2048 }
  0x1e   : > { %p1224_p12 = scmp.ne.s32.totalorder %s1841_s2, %s1223_s29  ;;  %p1230_p5 = scmp.lt.u32.totalorder %s1223_s29, %s1841_s2 }
  0x20   : > { %p1226_p0 = pnand %p1225_p13, %p1224_p12 }
  0x22   : > { %p1227_p3 = pneg %p1226_p0 }
  0x24   : > { %p1232_p7 = pnand %p1230_p5, %p1227_p3 }
  0x26   : > { %1235 = shalt.err (!%p1232_p7)
}
  0x27   : > { %s1236_s22 = scalar_lea.vmem %s1530_s23, 2048  ;;  %p1244_p2 = scmp.lt.s32.totalorder %s1530_s23, %s1530_s23 }
  0x28   : > { %p1237_p9 = scmp.ne.s32.totalorder %s1530_s23, %s1236_s22  ;;  %p1245_p12 = scmp.lt.s32.totalorder %s1236_s22, %s1236_s22 }
  0x2a   : > { %p1239_p10 = pnand %p1237_p9, %p1225_p13  ;;  %p1246_p0 = por %p1245_p12, %p1244_p2 }
  0x2c   : > { %p1240_p1 = pneg %p1239_p10 }
  0x2e   : > { %p1247_p6 = pnand %p1246_p0, %p1240_p1 }
  0x30   : > { %1250 = shalt.err (!%p1247_p6)
}
  0x31   : > { %s1824_s25 = smov 128   ;;  %s1826_s27 = smov 8  }
  0x32   : > { %1113 = dma.hbm_to_vmem [thread:$0]  (!%p1537_p11), %s1841_s2, 2048, %s1530_s23, [#allocation6], %s1824_s25, %s1824_s25, %s1826_s27  }
  0x33   : > { %s1842_s4 = sld [smem:[#allocation22_spill]] }
  0x39   : > { %s1251_s12 = scalar_lea.hbm %s1842_s4, 2048 }
  0x3a   : > { %p1252_p1 = scmp.ne.s32.totalorder %s1842_s4, %s1251_s12  ;;  %p1258_p10 = scmp.lt.u32.totalorder %s1251_s12, %s1842_s4 }
  0x3c   : > { %p1254_p2 = pnand %p1252_p1, %p1225_p13 }
  0x3e   : > { %p1255_p6 = pneg %p1254_p2 }
  0x40   : > { %p1260_p3 = pnand %p1258_p10, %p1255_p6 }
  0x42   : > { %1263 = shalt.err (!%p1260_p3)
}
  0x43   : > { %s1264_s23 = scalar_lea.vmem %s1541_s26, 2048  ;;  %p1272_p12 = scmp.lt.s32.totalorder %s1541_s26, %s1541_s26 }
  0x44   : > { %p1265_p5 = scmp.ne.s32.totalorder %s1541_s26, %s1264_s23  ;;  %p1273_p0 = scmp.lt.s32.totalorder %s1264_s23, %s1264_s23 }
  0x46   : > { %p1267_p7 = pnand %p1265_p5, %p1225_p13  ;;  %p1274_p1 = por %p1273_p0, %p1272_p12 }
  0x48   : > { %p1268_p9 = pneg %p1267_p7 }
  0x4a   : > { %p1275_p2 = pnand %p1274_p1, %p1268_p9 }
  0x4c   : > { %1278 = shalt.err (!%p1275_p2)
}
  0x4d   : > { %s1423_s13 = smov 64   ;;  %s1424_s20 = smov 4  }
  0x4e   : > { %1116 = dma.hbm_to_vmem [thread:$0]  (!%p1537_p11), %s1842_s4, 2048, %s1541_s26, [#allocation9], %s1423_s13, %s1423_s13, %s1424_s20  }
  0x4f   : > { %s1599_s30 = sadd.s32 1, %s1417_s16   ;;  %s37_s12 = sadd.s32 1, %s1413_s15 }
  0x50   : > { %s34_s11 = ssub.s32 %s1417_s16, %s1599_s30  ;;  %p44_p6 = scmp.ne.s32.totalorder %s1413_s15, %s1409_s14 }
  0x51   : > { %p35_p13 = scmp.eq.s32.totalorder %s34_s11, 0  ;;  %p45_p10 = scmp.eq.s32.totalorder %s1417_s16, 0 }
  0x52   : > { %p1844_p5 = scmp.eq.s32.totalorder %s1507_s17, 1  ;;  %p1130_p9 = scmp.lt.s32.totalorder %s1417_s16, 2 }
  0x53   : > { %s1608_s18 = scalar_select %p35_p13, %s1413_s15, %s37_s12  }
  0x54   : > { %p46_p3 = por %p45_p10, %p44_p6  ;;  %p1612_p7 = por %p1844_p5, %p44_p6 }
  0x55   : > { %1843 = sst [smem:[#allocation19_spill]] %s1608_s18  ;;  %s338_s24 = sand.u32 1, %s1413_s15  }
  0x56   : > { %s1845_s22 = scalar_select %p1612_p7, 1, 0 }
  0x57   : > { %s1017_s23 = sshll.u32 %s338_s24, 4  ;;  %s1071_s26 = sshll.u32 %s1417_s16, 8 }
  0x58   : > { %s1846_s0 = sld [smem:[#allocation20_spill]]  ;;  %s342_s29 = scalar_lea.vmem [#allocation2], %s1017_s23 }
  0x59   : > { %s349_s11 = sshll.u32 %s342_s29, 4  ;;  %p1626_p11 = pnand %p1130_p9, %p46_p3  ;;  %s1624_s11 = int_to_ptr.vmem [resolvable:$true] %s349_s11 }
  0x5a   : > { %s1633_s13 = scalar_lea.hbm %s1811_s1, %s1071_s26  ;;  %s363_s20 = scalar_lea.vmem [#allocation5], %s1017_s23 }
  0x5b   : > { %s1635_s2 = sshll.u32 %s363_s20, 4  ;;  %s1637_s4 = scalar_lea.sflag [#allocation3], %s338_s24  ;;  %s1669_s2 = int_to_ptr.vmem [resolvable:$true] %s1635_s2 }
  0x5c   : > { %p1281_p0 = pneg %p1626_p11 }
  0x5e   : > { %s1622_s28 = scalar_lea.hbm %s1846_s0, %s1071_s26  ;;  %s1284_s25 = scalar_lea.hbm %s1846_s0, 512 }
  0x5f   : > { %s1279_s29 = scalar_lea.hbm %s1622_s28, 256  ;;  %p1285_p13 = scmp.lt.u32.totalorder %s1622_s28, %s1846_s0 }
  0x60   : > { %p1280_p12 = scmp.ne.s32.totalorder %s1622_s28, %s1279_s29  ;;  %p1286_p6 = scmp.lt.u32.totalorder %s1284_s25, %s1279_s29 }
  0x61   : > { %p1288_p3 = scmp.lt.u32.totalorder %s1279_s29, %s1622_s28 }
  0x62   : > { %p1282_p1 = pnand %p1281_p0, %p1280_p12  ;;  %p1287_p10 = por %p1286_p6, %p1285_p13 }
  0x64   : > { %p1283_p2 = pneg %p1282_p1  ;;  %p1289_p5 = por %p1288_p3, %p1287_p10 }
  0x66   : > { %p1290_p9 = pnand %p1289_p5, %p1283_p2 }
  0x68   : > { %1293 = shalt.err (!%p1290_p9)
}
  0x69   : > { %s1294_s24 = scalar_lea.vmem %s1624_s11, 256  ;;  %s1425_s15 = smov [#allocation2]  }
  0x6a   : > { %p1295_p12 = scmp.ne.s32.totalorder %s1624_s11, %s1294_s24  ;;  %s1299_s18 = sshll.u32 %s1425_s15, 4  ;;  %s1300_s18 = int_to_ptr.vmem [resolvable:$false] %s1299_s18 }
  0x6b   : > { %s1301_s23 = scalar_lea.vmem %s1300_s18, 512  ;;  %p1302_p4 = scmp.lt.s32.totalorder %s1624_s11, %s1300_s18 }
  0x6c   : > { %p1297_p1 = pnand %p1295_p12, %p1281_p0  ;;  %p1303_p13 = scmp.lt.s32.totalorder %s1301_s23, %s1294_s24 }
  0x6e   : > { %p1298_p7 = pneg %p1297_p1  ;;  %p1304_p6 = por %p1303_p13, %p1302_p4 }
  0x70   : > { %p1305_p10 = pnand %p1304_p6, %p1298_p7 }
  0x72   : > { %1308 = shalt.err (!%p1305_p10)
}
  0x73   : > { %s1848_s20 = smov 8   ;;  %s1849_s29 = smov 128  }
  0x74   : > { %1120 = dma.hbm_to_vmem [thread:$0]  (!%p1626_p11), %s1622_s28, 256, %s1624_s11, %s1637_s4, %s1849_s29, %s1849_s29, %s1848_s20  }
  0x75   : > { %s359_s25 = sand.u32 1, %s1417_s16   ;;  %s1309_s26 = scalar_lea.hbm %s1633_s13, 256 }
  0x76   : > { %s1672_s27 = scalar_lea.sflag [#allocation6], %s359_s25  ;;  %p1310_p4 = scmp.ne.s32.totalorder %s1633_s13, %s1309_s26 }
  0x77   : > { %s1314_s18 = scalar_lea.hbm %s1811_s1, 512  ;;  %p1315_p3 = scmp.lt.u32.totalorder %s1633_s13, %s1811_s1 }
  0x78   : > { %p1312_p7 = pnand %p1310_p4, %p1281_p0  ;;  %p1316_p5 = scmp.lt.u32.totalorder %s1314_s18, %s1309_s26 }
  0x79   : > { %p1318_p12 = scmp.lt.u32.totalorder %s1309_s26, %s1633_s13 }
  0x7a   : > { %p1313_p2 = pneg %p1312_p7  ;;  %p1317_p9 = por %p1316_p5, %p1315_p3 }
  0x7c   : > { %p1319_p1 = por %p1318_p12, %p1317_p9 }
  0x7e   : > { %p1320_p13 = pnand %p1319_p1, %p1313_p2 }
  0x80   : > { %1323 = shalt.err (!%p1320_p13)
}
  0x81   : > { %s1324_s4 = scalar_lea.vmem %s1669_s2, 256  ;;  %s1426_s28 = smov [#allocation5]  }
  0x82   : > { %p1325_p6 = scmp.ne.s32.totalorder %s1669_s2, %s1324_s4  ;;  %s1329_s11 = sshll.u32 %s1426_s28, 4  ;;  %s1330_s11 = int_to_ptr.vmem [resolvable:$false] %s1329_s11 }
  0x83   : > { %s1331_s0 = scalar_lea.vmem %s1330_s11, 512  ;;  %p1332_p7 = scmp.lt.s32.totalorder %s1669_s2, %s1330_s11 }
  0x84   : > { %p1327_p10 = pnand %p1325_p6, %p1281_p0  ;;  %p1333_p3 = scmp.lt.s32.totalorder %s1331_s0, %s1324_s4 }
  0x86   : > { %p1328_p4 = pneg %p1327_p10  ;;  %p1334_p5 = por %p1333_p3, %p1332_p7 }
  0x88   : > { %p1335_p9 = pnand %p1334_p5, %p1328_p4 }
  0x8a   : > { %1338 = shalt.err (!%p1335_p9)
}
  0x8b   : > { %1123 = dma.hbm_to_vmem [thread:$0]  (!%p1626_p11), %s1633_s13, 256, %s1669_s2, %s1672_s27, %s1849_s29, %s1849_s29, %s1848_s20  }
  0x8c   : > { %382 = sbr.rel (%p1526_p8) target bundleno = 961 (0x3c1), region = 60  ;;  %s1704_s25 = sand.u32 (!%p1526_p8), 1, %s1409_s14  }
  0x8d   : > { %s1707_s26 = sshll.u32 (!%p1526_p8), %s1704_s25, 4  ;;  %s385_s12 = scalar_lea.sflag (!%p1526_p8), [#allocation3], %s1704_s25 }
  0x8e   : > { %s388_s24 = scalar_lea.vmem (!%p1526_p8), [#allocation2], %s1707_s26  ;;  %p1850_p0 = scmp.ne.s32.totalorder (!%p1526_p8), %s1836_s19, 0 }
  0x93   : > { %1384 = dma.done.wait (%p1850_p0), %s385_s12, 256  }
  0x94   : > { %1386 = vsyncadd (%p1850_p0), %s385_s12, 4294967040  ;;  %s393_s2 = sand.u32 1, %s1507_s17   ;;  %s397_s13 = scalar_lea.vmem [#allocation5], %s1707_s26 }
  0x95   : > { %s394_s21 = scalar_lea.sflag [#allocation6], %s393_s2 }
  0x96   : > { %1388 = dma.done.wait (%p1850_p0), %s394_s21, 256  }
  0x97   : > { %1390 = vsyncadd (%p1850_p0), %s394_s21, 4294967040  ;;  %p1851_p8 = scmp.eq.s32.totalorder %s1507_s17, 0 }
  0x99   : > { %1392 = dma.done.wait (%p1851_p8), [#allocation6], 2048   ;;  %p1852_p11 = pmov %p1851_p8 }
  0x9a   : > { %p1853_p2 = pmov %p1851_p8 }
  0x9b   : > { %1394 = vsyncadd (%p1852_p11), [#allocation6], 4294965248 }
  0x9c   : > { %1396 = dma.done.wait (%p1853_p2), [#allocation9], 2048   ;;  %p1854_p12 = pmov %p1853_p2 }
  0x9d   : > { %v451_v0 = vld [vmem:[%s388_s24] sm:$0xff]  ;;  %v452_v2 = vld [vmem:[%s388_s24 + $0x8] sm:$0xff]  ;;  %v1427_v19 = vmov 0   ;;  %s1073_s24 = sshll.u32 %s1507_s17, 8  ;;  %s446_s2 = scalar_lea.vmem [#allocation10], %s1707_s26 }
  0x9e   : > { %1398 = vsyncadd (%p1854_p12), [#allocation9], 4294965248  ;;  %v453_v1 = vld [vmem:[%s397_s13] sm:$0xff]  ;;  %v454_v4 = vld [vmem:[%s397_s13 + $0x8] sm:$0xff]  ;;  %642 = vmatprep.mubr.bf16.mxu0 %v1427_v19  ;;  %s897_s21 = sshll.u32 %s446_s2, 4  ;;  %s1764_s20 = scalar_lea.hbm %s1820_s10, %s1073_s24  ;;  %s1766_s21 = int_to_ptr.vmem [resolvable:$true] %s897_s21 }
  0x9f   : > { %v1729_v3 = vadd.f32 %v453_v1, %v451_v0  ;;  %v1731_v5 = vadd.f32 %v454_v4, %v452_v2  ;;  %v1175_v6 = vld [vmem:[#allocation7 + $0x4] ss:$8 sps:$4 sm:$0xff]   ;;  %v1177_v9 = vld [vmem:[#allocation7] ss:$8 sps:$4 sm:$0xff]   ;;  %v1178_v10 = vld [vmem:[#allocation7 + $0x14] ss:$8 sps:$4 sm:$0xff]   ;;  %v520_v4 = vlaneseq }
  0xa0   : > { %610 = vmatprep.subr.bf16.mxu0 %v1175_v6  ;;  %v1180_v11 = vld [vmem:[#allocation7 + $0x10] ss:$8 sps:$4 sm:$0xff]   ;;  %v1181_v12 = vld [vmem:[#allocation7 + $0x24] ss:$8 sps:$4 sm:$0xff]   ;;  %v1183_v13 = vld [vmem:[#allocation7 + $0x20] ss:$8 sps:$4 sm:$0xff]  }
  0xa1   : > { %459 = vadd.xlane.f32.xlu0 %v1729_v3  ;;  %v463_v7 = vmul.f32 %v1729_v3, %v1729_v3  ;;  %v464_v8 = vmul.f32 %v1731_v5, %v1731_v5  ;;  %611 = vmatpush1.bf16.msra.mxu0 %v1177_v9  ;;  %v1184_v14 = vld [vmem:[#allocation7 + $0x34] ss:$8 sps:$4 sm:$0xff]   ;;  %v1186_v15 = vld [vmem:[#allocation7 + $0x30] ss:$8 sps:$4 sm:$0xff]   ;;  %v1187_v16 = vld [vmem:[#allocation7 + $0x44] ss:$8 sps:$4 sm:$0xff]  }
  0xa2   : > { %612 = vmatprep.subr.bf16.mxu0 %v1178_v10  ;;  %v1189_v17 = vld [vmem:[#allocation7 + $0x40] ss:$8 sps:$4 sm:$0xff]   ;;  %v1190_v18 = vld [vmem:[#allocation7 + $0x54] ss:$8 sps:$4 sm:$0xff]   ;;  %v1192_v20 = vld [vmem:[#allocation7 + $0x50] ss:$8 sps:$4 sm:$0xff]  }
  0xa3   : > { %465 = vadd.xlane.f32.xlu1 %v463_v7  ;;  %v1193_v21 = vld [vmem:[#allocation7 + $0x64] ss:$8 sps:$4 sm:$0xff]   ;;  %v1195_v22 = vld [vmem:[#allocation7 + $0x60] ss:$8 sps:$4 sm:$0xff]   ;;  %v1196_v23 = vld [vmem:[#allocation7 + $0x74] ss:$8 sps:$4 sm:$0xff]  }
  0xa4   : > { %v1198_v24 = vld [vmem:[#allocation7 + $0x70] ss:$8 sps:$4 sm:$0xff]   ;;  %v1199_v25 = vld [vmem:[#allocation8 + $0x40] sm:$0xff]   ;;  %v1201_v27 = vld [vmem:[#allocation8 + $0x48] sm:$0xff]   ;;  %s884_s29 = scalar_lea.sflag [#allocation4], %s1704_s25  ;;  %s1339_s27 = scalar_lea.vmem %s1766_s21, 256 }
  0xa5   : > { %461 = vadd.xlane.f32.xlu0 %v1731_v5  ;;  %613 = vmatpush1.bf16.msra.mxu0 %v1180_v11  ;;  %v1200_v26 = vld [vmem:[#allocation8] sm:$0xff]   ;;  %v1202_v28 = vld [vmem:[#allocation8 + $0x8] sm:$0xff]   ;;  %v1203_v29 = vld [vmem:[#allocation8 + $0x50] sm:$0xff]   ;;  %p1340_p1 = scmp.ne.s32.totalorder %s1766_s21, %s1339_s27  ;;  %p1855_p13 = scmp.ne.s32.totalorder %s1845_s22, 0 }
  0xa6   : > { %614 = vmatprep.subr.bf16.mxu0 %v1181_v12  ;;  %1074 = vmatprep.subr.bf16.mxu1 %v1199_v25  ;;  %v1204_v30 = vld [vmem:[#allocation8 + $0x10] sm:$0xff]   ;;  %v1205_v31 = vld [vmem:[#allocation8 + $0x58] sm:$0xff]   ;;  %v1207_v33 = vld [vmem:[#allocation8 + $0x60] sm:$0xff]   ;;  %s1428_s17 = smov [#allocation10]  }
  0xa7   : > { %467 = vadd.xlane.f32.xlu1 %v464_v8  ;;  %1075 = vmatpush3.bf16.msra.mxu1 %v1200_v26  ;;  %v1206_v32 = vld [vmem:[#allocation8 + $0x18] sm:$0xff]   ;;  %v1208_v34 = vld [vmem:[#allocation8 + $0x20] sm:$0xff]   ;;  %v1209_v35 = vld [vmem:[#allocation8 + $0x68] sm:$0xff]   ;;  %p1341_p6 = pnand %p1340_p1, %p1855_p13  ;;  %s1343_s26 = sshll.u32 %s1428_s17, 4  ;;  %s1344_s26 = int_to_ptr.vmem [resolvable:$false] %s1343_s26 }
  0xa8   : > { %1076 = vmatprep.subr.bf16.mxu1 %v1201_v27  ;;  %v1029_v53 = vld [vmem:[%s1816_s6] ss:$0 sm:$0xff]  ;;  %v1210_v63 = vld [vmem:[#allocation8 + $0x28] sm:$0xff]   ;;  %v1211_v0 = vld [vmem:[#allocation8 + $0x70] sm:$0xff]   ;;  %s1345_s15 = scalar_lea.vmem %s1344_s26, 512  ;;  %p1346_p4 = scmp.lt.s32.totalorder %s1766_s21, %s1344_s26 }
  0xa9   : > { %615 = vmatpush1.bf16.msra.mxu0 %v1183_v13  ;;  %v1030_v58 = vld [vmem:[%s1817_s7] ss:$0 sm:$0xff]  ;;  %v1212_v1 = vld [vmem:[#allocation8 + $0x30] sm:$0xff]   ;;  %v1213_v2 = vld [vmem:[#allocation8 + $0x78] sm:$0xff]   ;;  %p1342_p10 = pneg %p1341_p6  ;;  %p1347_p7 = scmp.lt.s32.totalorder %s1345_s15, %s1339_s27 }
  0xaa   : > { %616 = vmatprep.subr.bf16.mxu0 %v1184_v14  ;;  %v518_v7 = vld [vmem:[%s1813_s3] sm:$0x3] }
  0xab   : > { %1077 = vmatpush3.bf16.msra.mxu1 %v1202_v28  ;;  %v1047_v26 = vld [vmem:[%s1815_s5] ss:$0 sm:$0xff]  ;;  %p1348_p3 = por %p1347_p7, %p1346_p4 }
  0xac   : > { %1078 = vmatprep.subr.bf16.mxu1 %v1203_v29 }
  0xad   : > { %617 = vmatpush1.bf16.msra.mxu0 %v1186_v15  ;;  %p1349_p5 = pnand %p1348_p3, %p1342_p10 }
  0xae   : > { %618 = vmatprep.subr.bf16.mxu0 %v1187_v16 }
  0xaf   : > { %1079 = vmatpush3.bf16.msra.mxu1 %v1204_v30 }
  0xb0   : > { %1080 = vmatprep.subr.bf16.mxu1 %v1205_v31 }
  0xb1   : > { %619 = vmatpush1.bf16.msra.mxu0 %v1189_v17 }
  0xb2   : > { %620 = vmatprep.subr.bf16.mxu0 %v1190_v18 }
  0xb3   : > { %1081 = vmatpush3.bf16.msra.mxu1 %v1206_v32 }
  0xb4   : > { %1082 = vmatprep.subr.bf16.mxu1 %v1207_v33 }
  0xb5   : > { %621 = vmatpush1.bf16.msra.mxu0 %v1192_v20 }
  0xb6   : > { %622 = vmatprep.subr.bf16.mxu0 %v1193_v21 }
  0xb7   : > { %1083 = vmatpush3.bf16.msra.mxu1 %v1208_v34 }
  0xb8   : > { %1084 = vmatprep.subr.bf16.mxu1 %v1209_v35 }
  0xb9   : > { %623 = vmatpush1.bf16.msra.mxu0 %v1195_v22 }
  0xba   : > { %624 = vmatprep.subr.bf16.mxu0 %v1196_v23 }
  0xbb   : > { %1085 = vmatpush3.bf16.msra.mxu1 %v1210_v63 }
  0xbc   : > { %1086 = vmatprep.subr.bf16.mxu1 %v1211_v0 }
  0xbd   : > { %625 = vmatpush1.bf16.msra.mxu0 %v1198_v24 }
  0xbf   : > { %1087 = vmatpush3.bf16.msra.mxu1 %v1212_v1 }
  0xc0   : > { %1088 = vmatprep.subr.bf16.mxu1 %v1213_v2 }
 0x12e   : > { %v460_v36 = vpop.xlane.xlu0 %459 }
 0x12f   : > { %v469_v37 = vmul.f32 0.0078125, %v460_v36 }
 0x130   : > { %v466_v38 = vpop.xlane.xlu1 %465 }
 0x131   : > { %v473_v39 = vmul.f32 %v469_v37, %v469_v37  ;;  %v471_v40 = vmul.f32 0.0078125, %v466_v38  ;;  %v477_v50 = vsub.f32 %v1729_v3, %v469_v37  ;;  %v1214_v3 = vld [vmem:[#allocation8 + $0x38] sm:$0xff]  }
 0x132   : > { %v462_v41 = vpop.xlane.xlu0 %461  ;;  %1089 = vmatpush3.bf16.msra.mxu1 %v1214_v3 }
 0x133   : > { %v475_v42 = vsub.f32 %v471_v40, %v473_v39  ;;  %v470_v43 = vmul.f32 0.0078125, %v462_v41 }
 0x134   : > { %v468_v44 = vpop.xlane.xlu1 %467 }
 0x135   : > { %v479_v45 = vadd.f32 1e-05, %v475_v42  ;;  %v474_v46 = vmul.f32 %v470_v43, %v470_v43  ;;  %v472_v47 = vmul.f32 0.0078125, %v468_v44  ;;  %v478_v54 = vsub.f32 %v1731_v5, %v470_v43 }
 0x136   : > { %v521_v5 = vshrl.u32 %v520_v4, 7 }
 0x137   : > { %1215 = vrsqrt.f32 %v479_v45  ;;  %v476_v48 = vsub.f32 %v472_v47, %v474_v46 }
 0x138   : > { %v522_v6 = vsub.s32 0, %v521_v5  ;;  %v526_v8 = vsub.s32 1, %v521_v5 }
 0x139   : > { %v480_v49 = vadd.f32 1e-05, %v476_v48 }
 0x13a   : > { %v523_v9 = vrot.slane %v518_v7, %v522_v6  ;;  %v527_v10 = vrot.slane %v518_v7, %v526_v8 }
 0x13b   : > { %1217 = vrsqrt.f32 %v480_v49 }
 0x141   : > { %v1216_v51 = vpop.eup %1215 }
 0x142   : > { %v483_v52 = vmul.f32 %v1216_v51, %v477_v50 }
 0x144   : > { %v491_v57 = vmul.f32 %v1029_v53, %v483_v52 }
 0x145   : > { %v1218_v55 = vpop.eup %1217 }
 0x146   : > { %v484_v56 = vmul.f32 %v1218_v55, %v478_v54  ;;  %v499_v60 = vadd.f32 %v1030_v58, %v491_v57  ;;  %v1064_v54 = vld [vmem:[%s1818_s8] ss:$0 sm:$0xff] }
 0x148   : > { %v492_v59 = vmul.f32 %v1029_v53, %v484_v56 }
 0x14a   : > { %v500_v61 = vadd.f32 %v1030_v58, %v492_v59  ;;  %v1065_v58 = vld [vmem:[%s1819_s9] ss:$0 sm:$0xff] }
 0x14c   : > { %v501_v62 = vpack.c.bf16 %v500_v61, %v499_v60 }
 0x14e   : > { %643 = vmatmul.mubr.bf16.vlgmr.msra.gmra.mrb[0].mxu0 %v501_v62 }
 0x221   : > { %v644_v11 = vpop.f32.mrb[0].mxu0 }
 0x222   : > { %v645_v12 = vadd.f32 %v644_v11, %v523_v9  ;;  %v646_v13 = vpop.f32.mrb[1].mxu0 }
 0x223   : > { %v647_v14 = vadd.f32 %v646_v13, %v527_v10  ;;  %v648_v15 = vpop.f32.mrb[2].mxu0 }
 0x224   : > { %v649_v16 = vadd.f32 %v648_v15, %v523_v9  ;;  %v650_v17 = vpop.f32.mrb[3].mxu0  ;;  %v653_v19 = vmax.f32 %v645_v12, 0.0 }
 0x225   : > { %v651_v18 = vadd.f32 %v650_v17, %v527_v10  ;;  %v654_v21 = vmax.f32 %v647_v14, 0.0 }
 0x226   : > { %v655_v20 = vmax.f32 %v649_v16, 0.0 }
 0x227   : > { %v656_v22 = vmax.f32 %v651_v18, 0.0 }
 0x228   : > { %v657_v23 = vpack.c.bf16 %v655_v20, %v653_v19 }
 0x229   : > { %v658_v24 = vpack.c.bf16 %v656_v22, %v654_v21 }
 0x22b   : > { %826 = vmatprep.mubr.bf16.mxu1 %v658_v24 }
 0x22c   : > { %827 = vmatmul.mubr.bf16.vlgmr.msra.gmra.mrb[0].mxu1 %v657_v23 }
 0x2ff   : > { %v1090_v25 = vpop.f32.mrb[0].mxu1 }
 0x300   : > { %v1091_v27 = vpop.f32.mrb[1].mxu1 }
 0x301   : > { %v1092_v28 = vadd.f32 %v1091_v27, %v1090_v25  ;;  %v1093_v29 = vpop.f32.mrb[2].mxu1 }
 0x302   : > { %v1094_v30 = vpop.f32.mrb[3].mxu1 }
 0x303   : > { %v829_v31 = vadd.f32 %v1092_v28, %v1047_v26  ;;  %v1095_v32 = vadd.f32 %v1094_v30, %v1093_v29 }
 0x305   : > { %v832_v33 = vadd.f32 %v1095_v32, %v1047_v26  ;;  %v835_v34 = vadd.f32 %v829_v31, %v499_v60 }
 0x307   : > { %839 = vadd.xlane.f32.xlu0 %v835_v34  ;;  %v836_v35 = vadd.f32 %v832_v33, %v500_v61  ;;  %v843_v36 = vmul.f32 %v835_v34, %v835_v34 }
 0x309   : > { %841 = vadd.xlane.f32.xlu1 %v836_v35  ;;  %v844_v37 = vmul.f32 %v836_v35, %v836_v35 }
 0x30b   : > { %845 = vadd.xlane.f32.xlu0 %v843_v36 }
 0x30d   : > { %847 = vadd.xlane.f32.xlu1 %v844_v37 }
 0x394   : > { %v840_v38 = vpop.xlane.xlu0 %839 }
 0x395   : > { %v849_v39 = vmul.f32 0.0078125, %v840_v38 }
 0x396   : > { %v842_v40 = vpop.xlane.xlu1 %841 }
 0x397   : > { %v850_v41 = vmul.f32 0.0078125, %v842_v40  ;;  %v853_v43 = vmul.f32 %v849_v39, %v849_v39  ;;  %v857_v52 = vsub.f32 %v835_v34, %v849_v39 }
 0x398   : > { %v846_v42 = vpop.xlane.xlu0 %845 }
 0x399   : > { %v851_v44 = vmul.f32 0.0078125, %v846_v42  ;;  %v854_v46 = vmul.f32 %v850_v41, %v850_v41  ;;  %v858_v55 = vsub.f32 %v836_v35, %v850_v41 }
 0x39a   : > { %v848_v45 = vpop.xlane.xlu1 %847 }
 0x39b   : > { %v855_v47 = vsub.f32 %v851_v44, %v853_v43  ;;  %v852_v48 = vmul.f32 0.0078125, %v848_v45 }
 0x39d   : > { %v859_v49 = vadd.f32 1e-05, %v855_v47  ;;  %v856_v50 = vsub.f32 %v852_v48, %v854_v46 }
 0x39f   : > { %1219 = vrsqrt.f32 %v859_v49  ;;  %v860_v51 = vadd.f32 1e-05, %v856_v50 }
 0x3a1   : > { %1221 = vrsqrt.f32 %v860_v51 }
 0x3a9   : > { %v1220_v53 = vpop.eup %1219 }
 0x3aa   : > { %v863_v56 = vmul.f32 %v1220_v53, %v857_v52 }
 0x3ab   : > { %v1222_v57 = vpop.eup %1221 }
 0x3ac   : > { %v871_v59 = vmul.f32 %v1064_v54, %v863_v56  ;;  %v864_v60 = vmul.f32 %v1222_v57, %v858_v55 }
 0x3ae   : > { %v879_v61 = vadd.f32 %v1065_v58, %v871_v59  ;;  %v872_v62 = vmul.f32 %v1064_v54, %v864_v60 }
 0x3b0   : > { %v880_v63 = vadd.f32 %v1065_v58, %v872_v62  ;;  %881 = vst [vmem:[%s446_s2] sm:$0xff] %v879_v61 }
 0x3b2   : > { %882 = vst [vmem:[%s446_s2 + $0x8] sm:$0xff] %v880_v63 }
 0x3b3   : > { %1352 = shalt.err (!%p1349_p5)
}
 0x3b4   : > { %s1353_s18 = scalar_lea.hbm %s1764_s20, 256  ;;  %s1357_s28 = scalar_lea.hbm %s1820_s10, 512 }
 0x3b5   : > { %p1354_p9 = scmp.ne.s32.totalorder %s1764_s20, %s1353_s18  ;;  %p1358_p11 = scmp.lt.u32.totalorder %s1764_s20, %s1820_s10 }
 0x3b6   : > { %p1359_p2 = scmp.lt.u32.totalorder %s1357_s28, %s1353_s18  ;;  %p1361_p1 = scmp.lt.u32.totalorder %s1353_s18, %s1764_s20 }
 0x3b7   : > { %p1355_p0 = pnand %p1354_p9, %p1855_p13 }
 0x3b8   : > { %p1360_p12 = por %p1359_p2, %p1358_p11 }
 0x3b9   : > { %p1356_p8 = pneg %p1355_p0 }
 0x3ba   : > { %p1362_p6 = por %p1361_p1, %p1360_p12 }
 0x3bc   : > { %p1363_p10 = pnand %p1362_p6, %p1356_p8 }
 0x3be   : > { %1366 = shalt.err (!%p1363_p10)
}
 0x3bf   : > { %s1429_s12 = smov 128   ;;  %s1430_s24 = smov 8  }
 0x3c0   : > { %1108 = dma.vmem_to_hbm [thread:$0]  (%p1855_p13), %s1766_s21, 256, %s1764_s20, %s884_s29, %s1429_s12, %s1429_s12, %s1430_s24  }
 0x3c1 PF: > { %s1856_s2 = sld [smem:[#allocation16_spill]]  ;;  %s1857_s13 = sld [smem:[#allocation18_spill]] }
 0x3c2   : > { %p1859_p7 = scmp.ge.s32.totalorder %s1417_s16, 2 }
 0x3c7   : > { %s912_s19 = sand.u32 1, %s1856_s2   ;;  %p1858_p4 = scmp.ne.s32.totalorder %s1857_s13, 0 }
 0x3c8   : > { %s913_s27 = scalar_lea.sflag [#allocation4], %s912_s19 }
 0x3c9   : > { %p1125_p3 = pnand %p1859_p7, %p1858_p4 }
 0x3cb   : > { %1400 = dma.done.wait (!%p1125_p3), %s913_s27, 256  }
 0x3cc   : > { %1402 = vsyncadd (!%p1125_p3), %s913_s27, 4294967040  ;;  %s1860_s17 = sld [smem:[#allocation17_spill]]  ;;  %s1861_s15 = sld [smem:[#allocation19_spill]] }
 0x3cd   : > { %p27_p5 = scmp.ge.s32.totalorder %s1599_s30, 4   ;;  %s1862_s13 = smov %s1409_s14 }
 0x3ce   : > { %s1864_s16 = smov %s1599_s30 }
 0x3cf   :  { %29 = sbr.rel (!%p27_p5) target bundleno = 12 (0xc), region = 126 }
 0x3d2   : > { %s1863_s14 = smov %s1860_s17 }
 0x3d6   :  { %918 = vsyncpa [#allocation3], 1 }
 0x3d7   :  { %920 = vsyncpa [#allocation3 + $0x1], 1 }
 0x3d8   :  { %921 = vsyncpa [#allocation6], 1 }
 0x3d9   :  { %923 = vsyncpa [#allocation6 + $0x1], 1 }
 0x3da   :  { %924 = vsyncpa [#allocation9], 1 }
 0x3db   :  { %925 = vsyncpa [#allocation4], 1 }
 0x3dc   :  { %927 = vsyncpa [#allocation4 + $0x1], 1 }

</bundles_post_ra>
